<compile_context>
chip_gen: v7x
topology: tpu7x:2x2x1
jax: 0.10.0
libtpu: 0.0.40
codegen_flags: <defaults>
</compile_context>

<pallas_src>
import math
import functools

import jax
import jax.numpy as jnp
from jax.experimental import pallas as pl
from jax.experimental.pallas import tpu as pltpu


def _round_up(n, m):
    return ((n + m - 1) // m) * m


def adapter_kernel(x_ref, ln_w_ref, ln_b_ref,
                   wd_ref, bd_ref, wu_ref, bu_ref,
                   out_ref, *, true_d):
    """Fused Adapter forward for one (TN, Dp) tile of tokens.

    x_ref:    (TN, Dp)      input tokens (model dtype), feature-padded with 0
    ln_w_ref: (1, Dp)  f32  LayerNorm gamma (0 in padded cols)
    ln_b_ref: (1, Dp)  f32  LayerNorm beta  (0 in padded cols)
    wd_ref:   (Dp, Dbp)     down-proj weight, transposed, zero-padded
    bd_ref:   (1, Dbp) f32  down-proj bias (zero-padded)
    wu_ref:   (Dbp, Dp)     up-proj weight, transposed, zero-padded, *scale folded in*
    bu_ref:   (1, Dp)  f32  up-proj bias, *scale folded in*
    out_ref:  (TN, Dp)      output (model dtype)
    """
    xf = x_ref[...].astype(jnp.float32)
    inv_d = 1.0 / float(true_d)
    # LayerNorm stats in a single pass: padded columns are exactly zero, so
    # dividing the sums by the true (unpadded) D gives the correct mean/E[x^2].
    mean = jnp.sum(xf, axis=-1, keepdims=True) * inv_d
    mean_sq = jnp.sum(xf * xf, axis=-1, keepdims=True) * inv_d
    var = mean_sq - mean * mean
    inv_std = jax.lax.rsqrt(var + 1e-5)
    # gamma is zero in padded columns -> x_ln is exactly 0 there.
    x_ln = (xf - mean) * inv_std * ln_w_ref[...] + ln_b_ref[...]

    # down projection (bf16 MXU path when model dtype is bf16, f32 accumulate)
    down = jnp.dot(x_ln.astype(wd_ref.dtype), wd_ref[...],
                   preferred_element_type=jnp.float32)
    down = down + bd_ref[...]
    # exact erf-form GELU (PyTorch nn.GELU default); GELU(0)=0 keeps padding exact
    down = 0.5 * down * (1.0 + jax.lax.erf(down * (1.0 / math.sqrt(2.0))))

    # TODO(synk): dropout is identity in eval mode (and p=0.0 default); not applied.

    # up projection; the learnable scalar is pre-folded into wu/bu (wrapper).
    up = jnp.dot(down.astype(wu_ref.dtype), wu_ref[...],
                 preferred_element_type=jnp.float32)
    out_ref[...] = (up + bu_ref[...]).astype(out_ref.dtype)


def _vmem_capacity_bytes():
    try:
        cap = int(pltpu.get_tpu_info().vmem_capacity_bytes)
        if cap > 0:
            return cap
    except Exception:
        pass
    return 64 * 1024 * 1024   # conservative, v7x-class fallback


def _choose_tile_n(N, Dp, Dbp, itemsize, tile_n, vmem_limit):
    """Pick the token-tile size from the VMEM budget and grid-step targets."""
    sub = 16 if itemsize == 2 else 8
    # resident operands (single-buffered via Buffered(1)) + safety margin
    weight_bytes = 2 * Dp * Dbp * itemsize + (3 * Dp + Dbp) * 4
    avail = max(vmem_limit - weight_bytes - 2 * 1024 * 1024, sub * 1024)
    # per-row VMEM: double-buffered x/out tiles (model dtype) + f32 temporaries
    per_row = 4 * Dp * itemsize + 12 * Dp + 8 * Dbp
    tn_budget = max(sub, (avail // per_row) // sub * sub)
    n_rows = _round_up(max(N, 1), sub)
    if tile_n is None:
        # ~4 MiB x-tile amortizes the ~0.35us per-grid-step overhead
        target = max(sub, (4 * 1024 * 1024) // max(Dp * itemsize, 1))
        tn = min(tn_budget, _round_up(target, sub))
        # keep >= ~4 grid steps so both v7x TensorCores get work
        if N >= 4 * sub:
            tn = min(tn, _round_up(-(-N // 4), sub))
    else:
        tn = min(_round_up(max(int(tile_n), 1), sub), tn_budget)
    return max(sub, min(tn, n_rows))


@functools.partial(jax.jit, static_argnames=("tile_n",))
def adapter_forward(x, ln_w, ln_b, w_down, b_down, w_up, b_up, scale,
                    *, tile_n=None):
    """x: (..., D) -> (..., D).  w_down: (D, Db) = W_down^T, w_up: (Db, D) = W_up^T."""
    orig_shape = x.shape
    D = orig_shape[-1]
    x2 = x.reshape(-1, D)
    N = x2.shape[0]
    Db = w_down.shape[1]

    # --- fold the learnable scalar into the up projection (removes one f32 pass) ---
    scale_f = scale.astype(jnp.float32).reshape(())
    w_up = w_up.astype(jnp.float32) * scale_f
    b_up = b_up.astype(jnp.float32) * scale_f

    # --- pad both feature dims to multiples of 128 (lane-dense MXU / stores) ---
    Dp = _round_up(D, 128)
    Dbp = _round_up(Db, 128)
    if Dp != D:
        x2 = jnp.pad(x2, ((0, 0), (0, Dp - D)))
        ln_w = jnp.pad(ln_w, ((0, 0), (0, Dp - D)))
        ln_b = jnp.pad(ln_b, ((0, 0), (0, Dp - D)))
        w_down = jnp.pad(w_down, ((0, Dp - D), (0, 0)))
        w_up = jnp.pad(w_up, ((0, 0), (0, Dp - D)))
        b_up = jnp.pad(b_up, ((0, 0), (0, Dp - D)))
    if Dbp != Db:
        w_down = jnp.pad(w_down, ((0, 0), (0, Dbp - Db)))
        b_down = jnp.pad(b_down, ((0, 0), (0, Dbp - Db)))
        w_up = jnp.pad(w_up, ((0, Dbp - Db), (0, 0)))

    # --- matmul operands in the model dtype; LN params / biases in f32 ---
    w_dtype = x2.dtype
    w_down = w_down.astype(w_dtype)
    w_up = w_up.astype(w_dtype)
    ln_w = ln_w.astype(jnp.float32)
    ln_b = ln_b.astype(jnp.float32)
    b_down = b_down.astype(jnp.float32)
    b_up = b_up.astype(jnp.float32)

    # --- chip-aware VMEM limit + token-tile choice, pad N to the tile ---
    itemsize = jnp.dtype(w_dtype).itemsize
    vmem_limit = min(int(0.75 * _vmem_capacity_bytes()), 100 * 1024 * 1024)
    tn = _choose_tile_n(N, Dp, Dbp, itemsize, tile_n, vmem_limit)
    Np = _round_up(max(N, 1), tn)
    if Np != N:
        x2 = jnp.pad(x2, ((0, Np - N), (0, 0)))

    # resident operands: constant index_map -> single VMEM copy is enough
    resident = {"pipeline_mode": pl.Buffered(1)} if hasattr(pl, "Buffered") else {}

    kernel = functools.partial(adapter_kernel, true_d=D)
    grid = (Np // tn,)

    out = pl.pallas_call(
        kernel,
        out_shape=jax.ShapeDtypeStruct((Np, Dp), x2.dtype),
        grid_spec=pltpu.PrefetchScalarGridSpec(
            num_scalar_prefetch=0,
            grid=grid,
            in_specs=[
                pl.BlockSpec((tn, Dp), lambda i: (i, 0)),               # x tile
                pl.BlockSpec((1, Dp), lambda i: (0, 0), **resident),    # ln gamma
                pl.BlockSpec((1, Dp), lambda i: (0, 0), **resident),    # ln beta
                pl.BlockSpec((Dp, Dbp), lambda i: (0, 0), **resident),  # W_down^T
                pl.BlockSpec((1, Dbp), lambda i: (0, 0), **resident),   # b_down
                pl.BlockSpec((Dbp, Dp), lambda i: (0, 0), **resident),  # W_up^T (*scale)
                pl.BlockSpec((1, Dp), lambda i: (0, 0), **resident),    # b_up   (*scale)
            ],
            out_specs=pl.BlockSpec((tn, Dp), lambda i: (i, 0)),
        ),
        compiler_params=pltpu.CompilerParams(
            dimension_semantics=("parallel",),
            vmem_limit_bytes=vmem_limit),
    )(x2, ln_w, ln_b, w_down, b_down, w_up, b_up)

    return out[:N, :D].reshape(orig_shape)


def make_adapter_params(key, in_dim, bottleneck_dim, dtype=jnp.float32):
    """Parameter shapes mirroring the module.  PyTorch zero-inits up_proj and the
    down bias; we use small deterministic values so the full compute path is
    exercised (scale=1.0, LN gamma=1 / beta=0 match nn.LayerNorm defaults)."""
    k1, k2, k3, k4 = jax.random.split(key, 4)
    bound_d = 1.0 / math.sqrt(in_dim)       # kaiming_uniform_(a=sqrt(5)) bound
    w_down = jax.random.uniform(k1, (in_dim, bottleneck_dim), dtype,
                                minval=-bound_d, maxval=bound_d)   # (D, Db) = W_down^T
    b_down = 0.01 * jax.random.normal(k2, (1, bottleneck_dim), dtype)
    bound_u = 1.0 / math.sqrt(bottleneck_dim)
    w_up = jax.random.uniform(k3, (bottleneck_dim, in_dim), dtype,
                              minval=-bound_u, maxval=bound_u)     # (Db, D) = W_up^T
    b_up = 0.01 * jax.random.normal(k4, (1, in_dim), dtype)
    ln_w = jnp.ones((1, in_dim), dtype)
    ln_b = jnp.zeros((1, in_dim), dtype)
    scale = jnp.ones((1, 1), dtype)
    return ln_w, ln_b, w_down, b_down, w_up, b_up, scale


def adapter_reference(x, ln_w, ln_b, w_down, b_down, w_up, b_up, scale):
    """Pure-JAX f32 reference."""
    x = x.astype(jnp.float32)
    mean = jnp.mean(x, axis=-1, keepdims=True)
    var = jnp.mean((x - mean) ** 2, axis=-1, keepdims=True)
    x_ln = (x - mean) * jax.lax.rsqrt(var + 1e-5) * ln_w[0] + ln_b[0]
    down = x_ln @ w_down + b_down[0]
    down = 0.5 * down * (1.0 + jax.lax.erf(down / math.sqrt(2.0)))
    up = down @ w_up + b_up[0]
    return up * scale[0, 0]


if __name__ == "__main__":
    key = jax.random.PRNGKey(0)
    kx1, kx2, kx3, kp, kp2 = jax.random.split(key, 5)

    # --- Test 1: f32, ragged token count (N padding) + bottleneck pad 48->128 ---
    B, S, in_dim, bottleneck_dim = 2, 9, 128, 48
    params = make_adapter_params(kp, in_dim, bottleneck_dim)
    x = jax.random.normal(kx1, (B, S, in_dim), jnp.float32)
    out = jax.block_until_ready(adapter_forward(x, *params))
    ref = adapter_reference(x, *params)
    assert out.shape == x.shape
    assert jnp.allclose(out, ref, atol=1e-4, rtol=1e-4), "f32 mismatch vs reference"

    # --- Test 2: bf16 IO / bf16 MXU operands, explicit tile -> multi-step grid ---
    B2, S2 = 4, 160
    x_bf16 = jax.random.normal(kx2, (B2, S2, in_dim), jnp.float32).astype(jnp.bfloat16)
    out_bf16 = jax.block_until_ready(adapter_forward(x_bf16, *params, tile_n=256))
    ref_bf16 = adapter_reference(x_bf16.astype(jnp.float32), *params)
    assert out_bf16.shape == x_bf16.shape
    assert jnp.allclose(out_bf16.astype(jnp.float32), ref_bf16,
                        atol=1e-1, rtol=1e-1), "bf16 mismatch vs reference"

    # --- Test 3: f32 with D not a multiple of 128 (exercises D padding + true-D LN) ---
    B3, S3, in_dim3, bottleneck3 = 2, 5, 200, 33
    params3 = make_adapter_params(kp2, in_dim3, bottleneck3)
    x3 = jax.random.normal(kx3, (B3, S3, in_dim3), jnp.float32)
    out3 = jax.block_until_ready(adapter_forward(x3, *params3))
    ref3 = adapter_reference(x3, *params3)
    assert out3.shape == x3.shape
    assert jnp.allclose(out3, ref3, atol=1e-4, rtol=1e-4), "padded-D mismatch vs reference"

    print("KERNEL_OK")
</pallas_src>

<mosaic_0001>
module attributes {stable_mosaic.version = 11 : i64} {
  func.func @adapter_kernel(%arg0: i32, %arg1: memref<24x128xf32, #tpu.memory_space<vmem>>, %arg2: memref<1x128xf32, #tpu.memory_space<vmem>>, %arg3: memref<1x128xf32, #tpu.memory_space<vmem>>, %arg4: memref<128x128xf32, #tpu.memory_space<vmem>>, %arg5: memref<1x128xf32, #tpu.memory_space<vmem>>, %arg6: memref<128x128xf32, #tpu.memory_space<vmem>>, %arg7: memref<1x128xf32, #tpu.memory_space<vmem>>, %arg8: memref<24x128xf32, #tpu.memory_space<vmem>>) attributes {dimension_semantics = [#tpu.dimension_semantics<parallel>], iteration_bounds = array<i64: 1>, scalar_prefetch = 0 : i64, scratch_operands = 0 : i64, tpu.core_type = #tpu.core_type<tc>, window_params = [{transform_indices = @transform_0, window_bounds = array<i64: 24, 128>}, {pipeline_mode = #tpu.pipeline_mode<synchronous>, transform_indices = @transform_1, window_bounds = array<i64: 1, 128>}, {pipeline_mode = #tpu.pipeline_mode<synchronous>, transform_indices = @transform_2, window_bounds = array<i64: 1, 128>}, {pipeline_mode = #tpu.pipeline_mode<synchronous>, transform_indices = @transform_3, window_bounds = array<i64: 128, 128>}, {pipeline_mode = #tpu.pipeline_mode<synchronous>, transform_indices = @transform_4, window_bounds = array<i64: 1, 128>}, {pipeline_mode = #tpu.pipeline_mode<synchronous>, transform_indices = @transform_5, window_bounds = array<i64: 128, 128>}, {pipeline_mode = #tpu.pipeline_mode<synchronous>, transform_indices = @transform_6, window_bounds = array<i64: 1, 128>}, {transform_indices = @transform_7, window_bounds = array<i64: 24, 128>}]} {
    %c0 = arith.constant 0 : index
    %c0_0 = arith.constant 0 : index
    %0 = vector.load %arg1[%c0, %c0_0] : memref<24x128xf32, #tpu.memory_space<vmem>>, vector<24x128xf32>
    %cst = arith.constant dense<0.000000e+00> : vector<24xf32>
    %1 = vector.multi_reduction <add>, %0, %cst [1] : vector<24x128xf32> to vector<24xf32>
    %2 = vector.shape_cast %1 : vector<24xf32> to vector<24x1xf32>
    %cst_1 = arith.constant 7.812500e-03 : f32
    %3 = vector.broadcast %cst_1 : f32 to vector<24x1xf32>
    %4 = arith.mulf %2, %3 : vector<24x1xf32>
    %5 = arith.mulf %0, %0 : vector<24x128xf32>
    %cst_2 = arith.constant dense<0.000000e+00> : vector<24xf32>
    %6 = vector.multi_reduction <add>, %5, %cst_2 [1] : vector<24x128xf32> to vector<24xf32>
    %7 = vector.shape_cast %6 : vector<24xf32> to vector<24x1xf32>
    %cst_3 = arith.constant 7.812500e-03 : f32
    %8 = vector.broadcast %cst_3 : f32 to vector<24x1xf32>
    %9 = arith.mulf %7, %8 : vector<24x1xf32>
    %10 = arith.mulf %4, %4 : vector<24x1xf32>
    %11 = arith.subf %9, %10 : vector<24x1xf32>
    %cst_4 = arith.constant 9.99999974E-6 : f32
    %12 = vector.broadcast %cst_4 : f32 to vector<24x1xf32>
    %13 = arith.addf %11, %12 : vector<24x1xf32>
    %14 = math.rsqrt %13 : vector<24x1xf32>
    %15 = vector.broadcast %4 : vector<24x1xf32> to vector<24x128xf32>
    %16 = arith.subf %0, %15 : vector<24x128xf32>
    %17 = vector.broadcast %14 : vector<24x1xf32> to vector<24x128xf32>
    %18 = arith.mulf %16, %17 : vector<24x128xf32>
    %c0_5 = arith.constant 0 : index
    %c0_6 = arith.constant 0 : index
    %19 = vector.load %arg2[%c0_5, %c0_6] : memref<1x128xf32, #tpu.memory_space<vmem>>, vector<1x128xf32>
    %20 = vector.broadcast %19 : vector<1x128xf32> to vector<24x128xf32>
    %21 = arith.mulf %18, %20 : vector<24x128xf32>
    %c0_7 = arith.constant 0 : index
    %c0_8 = arith.constant 0 : index
    %22 = vector.load %arg3[%c0_7, %c0_8] : memref<1x128xf32, #tpu.memory_space<vmem>>, vector<1x128xf32>
    %23 = vector.broadcast %22 : vector<1x128xf32> to vector<24x128xf32>
    %24 = arith.addf %21, %23 : vector<24x128xf32>
    %c0_9 = arith.constant 0 : index
    %c0_10 = arith.constant 0 : index
    %25 = vector.load %arg4[%c0_9, %c0_10] : memref<128x128xf32, #tpu.memory_space<vmem>>, vector<128x128xf32>
    %cst_11 = arith.constant dense<0.000000e+00> : vector<24x128xf32>
    %26 = tpu.matmul %24, %25, %cst_11 {dimension_numbers = #tpu.dot_dimension_numbers<[1], [0], [0], [1], [0, 0, 1, 1], [], []>} : vector<24x128xf32>, vector<128x128xf32>, vector<24x128xf32> -> vector<24x128xf32>
    %c0_12 = arith.constant 0 : index
    %c0_13 = arith.constant 0 : index
    %27 = vector.load %arg5[%c0_12, %c0_13] : memref<1x128xf32, #tpu.memory_space<vmem>>, vector<1x128xf32>
    %28 = vector.broadcast %27 : vector<1x128xf32> to vector<24x128xf32>
    %29 = arith.addf %26, %28 : vector<24x128xf32>
    %cst_14 = arith.constant 5.000000e-01 : f32
    %30 = vector.broadcast %cst_14 : f32 to vector<24x128xf32>
    %31 = arith.mulf %30, %29 : vector<24x128xf32>
    %cst_15 = arith.constant 0.707106769 : f32
    %32 = vector.broadcast %cst_15 : f32 to vector<24x128xf32>
    %33 = arith.mulf %29, %32 : vector<24x128xf32>
    %34 = math.erf %33 : vector<24x128xf32>
    %cst_16 = arith.constant 1.000000e+00 : f32
    %35 = vector.broadcast %cst_16 : f32 to vector<24x128xf32>
    %36 = arith.addf %35, %34 : vector<24x128xf32>
    %37 = arith.mulf %31, %36 : vector<24x128xf32>
    %c0_17 = arith.constant 0 : index
    %c0_18 = arith.constant 0 : index
    %38 = vector.load %arg6[%c0_17, %c0_18] : memref<128x128xf32, #tpu.memory_space<vmem>>, vector<128x128xf32>
    %cst_19 = arith.constant dense<0.000000e+00> : vector<24x128xf32>
    %39 = tpu.matmul %37, %38, %cst_19 {dimension_numbers = #tpu.dot_dimension_numbers<[1], [0], [0], [1], [0, 0, 1, 1], [], []>} : vector<24x128xf32>, vector<128x128xf32>, vector<24x128xf32> -> vector<24x128xf32>
    %c0_20 = arith.constant 0 : index
    %c0_21 = arith.constant 0 : index
    %40 = vector.load %arg7[%c0_20, %c0_21] : memref<1x128xf32, #tpu.memory_space<vmem>>, vector<1x128xf32>
    %41 = vector.broadcast %40 : vector<1x128xf32> to vector<24x128xf32>
    %42 = arith.addf %39, %41 : vector<24x128xf32>
    %c0_22 = arith.constant 0 : index
    %c0_23 = arith.constant 0 : index
    %43 = vector.load %arg8[%c0_22, %c0_23] : memref<24x128xf32, #tpu.memory_space<vmem>>, vector<24x128xf32>
    tpu.vector_store %arg8[%c0_22, %c0_23], %42 {strides = array<i32>} : memref<24x128xf32, #tpu.memory_space<vmem>>, vector<24x128xf32>,
    return
  }
  func.func @transform_0(%arg0: i32) -> (i32, i32) {
    %c0_i32 = arith.constant 0 : i32
    %c0_i32_0 = arith.constant 0 : i32
    return %arg0, %c0_i32 : i32, i32
  }
  func.func @transform_1(%arg0: i32) -> (i32, i32) {
    %c0_i32 = arith.constant 0 : i32
    %c0_i32_0 = arith.constant 0 : i32
    %c0_i32_1 = arith.constant 0 : i32
    return %c0_i32, %c0_i32_0 : i32, i32
  }
  func.func @transform_2(%arg0: i32) -> (i32, i32) {
    %c0_i32 = arith.constant 0 : i32
    %c0_i32_0 = arith.constant 0 : i32
    %c0_i32_1 = arith.constant 0 : i32
    return %c0_i32, %c0_i32_0 : i32, i32
  }
  func.func @transform_3(%arg0: i32) -> (i32, i32) {
    %c0_i32 = arith.constant 0 : i32
    %c0_i32_0 = arith.constant 0 : i32
    %c0_i32_1 = arith.constant 0 : i32
    return %c0_i32, %c0_i32_0 : i32, i32
  }
  func.func @transform_4(%arg0: i32) -> (i32, i32) {
    %c0_i32 = arith.constant 0 : i32
    %c0_i32_0 = arith.constant 0 : i32
    %c0_i32_1 = arith.constant 0 : i32
    return %c0_i32, %c0_i32_0 : i32, i32
  }
  func.func @transform_5(%arg0: i32) -> (i32, i32) {
    %c0_i32 = arith.constant 0 : i32
    %c0_i32_0 = arith.constant 0 : i32
    %c0_i32_1 = arith.constant 0 : i32
    return %c0_i32, %c0_i32_0 : i32, i32
  }
  func.func @transform_6(%arg0: i32) -> (i32, i32) {
    %c0_i32 = arith.constant 0 : i32
    %c0_i32_0 = arith.constant 0 : i32
    %c0_i32_1 = arith.constant 0 : i32
    return %c0_i32, %c0_i32_0 : i32, i32
  }
  func.func @transform_7(%arg0: i32) -> (i32, i32) {
    %c0_i32 = arith.constant 0 : i32
    %c0_i32_0 = arith.constant 0 : i32
    return %arg0, %c0_i32 : i32, i32
  }
}

</mosaic_0001>

<bundles_post_ra>
// kernel: adapter_forward.1
= control target key start
LH: loop header
LB: loop body
LE: loop exit
PB: predicated region body
PF: predicated region fallthrough
CT: control target
= control target key end

     0   :  { %v503_v2 = vmov 0.0|0.0   ;;  %vm504_vm0 = vmmov 0   ;;  %v505_v28 = vmov 0.0   ;;  %s718_s0 = inlined_call_operand.vmem [shape: f32[24,128], index: 0, kind: input, shape index: {}]   ;;  %s719_s3 = inlined_call_operand.vmem [shape: f32[128,128], index: 3, kind: input, shape index: {}]   ;;  %s720_s5 = inlined_call_operand.vmem [shape: f32[128,128], index: 5, kind: input, shape index: {}]   ;;  %s721_s1 = inlined_call_operand.vmem [shape: f32[1,128], index: 1, kind: input, shape index: {}]   ;;  %s722_s2 = inlined_call_operand.vmem [shape: f32[1,128], index: 2, kind: input, shape index: {}]   ;;  %s723_s4 = inlined_call_operand.vmem [shape: f32[1,128], index: 4, kind: input, shape index: {}]   ;;  %s724_s6 = inlined_call_operand.vmem [shape: f32[1,128], index: 6, kind: input, shape index: {}]   ;;  %s725_s7 = inlined_call_operand.vmem [shape: f32[24,128], index: 7, kind: output, shape index: {}]  }
   0x1   :  { %v549_v0 = vld [vmem:[%s718_s0 + $0x8] sm:$0xff]  ;;  %v554_v1 = vld [vmem:[%s718_s0] sm:$0xff]  ;;  %440 = vmatprep.subr.bf16.mxu0 %v503_v2  ;;  %464 = vmatprep.subr.bf16.mxu1 %v503_v2  ;;  %v573_v7 = vld [vmem:[%s718_s0 + $0x10] sm:$0xff] }
   0x2   :  { %31 = vadd.xlane.f32.xlu1 %v549_v0  ;;  %29 = vadd.xlane.f32.xlu0 %v554_v1  ;;  %v39_v3 = vmul.f32 %v549_v0, %v549_v0  ;;  %v38_v4 = vmul.f32 %v554_v1, %v554_v1  ;;  %v88_v5 = vld [vmem:[%s719_s3] sm:$0xff]  ;;  %v89_v6 = vld [vmem:[%s719_s3 + $0x8] sm:$0xff]  ;;  %v40_v9 = vmul.f32 %v573_v7, %v573_v7  ;;  %v90_v10 = vld [vmem:[%s719_s3 + $0x10] sm:$0xff] }
   0x3   :  { %v441_v8 = vpack.c.bf16 %v89_v6, %v88_v5  ;;  %v91_v11 = vld [vmem:[%s719_s3 + $0x18] sm:$0xff]  ;;  %v92_v13 = vld [vmem:[%s719_s3 + $0x20] sm:$0xff]  ;;  %v93_v14 = vld [vmem:[%s719_s3 + $0x28] sm:$0xff]  ;;  %390 = vmatprep.mubr.msk.f32.mxu0 %vm504_vm0, %v505_v28  ;;  %431 = vmatprep.mubr.msk.f32.mxu1 %vm504_vm0, %v505_v28 }
   0x4   :  { %v444_v12 = vpack.c.bf16 %v91_v11, %v90_v10  ;;  %v447_v15 = vpack.c.bf16 %v93_v14, %v92_v13  ;;  %v94_v16 = vld [vmem:[%s719_s3 + $0x30] sm:$0xff]  ;;  %v95_v17 = vld [vmem:[%s719_s3 + $0x38] sm:$0xff]  ;;  %v96_v19 = vld [vmem:[%s719_s3 + $0x40] sm:$0xff] }
   0x5   :  { %442 = vmatpush3.bf16.msra.mxu0 %v441_v8  ;;  %v450_v18 = vpack.c.bf16 %v95_v17, %v94_v16  ;;  %v97_v20 = vld [vmem:[%s719_s3 + $0x48] sm:$0xff]  ;;  %v98_v22 = vld [vmem:[%s719_s3 + $0x50] sm:$0xff]  ;;  %v99_v23 = vld [vmem:[%s719_s3 + $0x58] sm:$0xff] }
   0x6   :  { %43 = vadd.xlane.f32.xlu1 %v39_v3  ;;  %41 = vadd.xlane.f32.xlu0 %v38_v4  ;;  %v453_v21 = vpack.c.bf16 %v97_v20, %v96_v19  ;;  %v456_v24 = vpack.c.bf16 %v99_v23, %v98_v22  ;;  %v100_v25 = vld [vmem:[%s719_s3 + $0x60] sm:$0xff]  ;;  %v101_v26 = vld [vmem:[%s719_s3 + $0x68] sm:$0xff]  ;;  %v102_v29 = vld [vmem:[%s719_s3 + $0x70] sm:$0xff] }
   0x7   :  { %443 = vmatprep.subr.bf16.mxu0 %v503_v2  ;;  %v459_v27 = vpack.c.bf16 %v101_v26, %v100_v25  ;;  %v103_v30 = vld [vmem:[%s719_s3 + $0x78] sm:$0xff]  ;;  %v206_v32 = vld [vmem:[%s720_s5] sm:$0xff]  ;;  %v207_v33 = vld [vmem:[%s720_s5 + $0x8] sm:$0xff] }
   0x8   :  { %v462_v31 = vpack.c.bf16 %v103_v30, %v102_v29  ;;  %v208_v34 = vld [vmem:[%s720_s5 + $0x10] sm:$0xff]  ;;  %v465_v35 = vpack.c.bf16 %v207_v33, %v206_v32  ;;  %v209_v36 = vld [vmem:[%s720_s5 + $0x18] sm:$0xff]  ;;  %v210_v38 = vld [vmem:[%s720_s5 + $0x20] sm:$0xff] }
   0x9   :  { %445 = vmatpush3.bf16.msra.mxu0 %v444_v12  ;;  %v468_v37 = vpack.c.bf16 %v209_v36, %v208_v34  ;;  %v211_v39 = vld [vmem:[%s720_s5 + $0x28] sm:$0xff]  ;;  %v316_v5 = vld [vmem:[%s721_s1] ss:$0 sm:$0xff]  ;;  %v213_v17 = vld [vmem:[%s720_s5 + $0x38] sm:$0xff] }
   0xa   :  { %33 = vadd.xlane.f32.xlu0 %v573_v7  ;;  %45 = vadd.xlane.f32.xlu1 %v40_v9  ;;  %v471_v40 = vpack.c.bf16 %v211_v39, %v210_v38  ;;  %v317_v9 = vld [vmem:[%s722_s2] ss:$0 sm:$0xff]  ;;  %v215_v20 = vld [vmem:[%s720_s5 + $0x48] sm:$0xff]  ;;  %v216_v22 = vld [vmem:[%s720_s5 + $0x50] sm:$0xff] }
   0xb   :  { %446 = vmatprep.subr.bf16.mxu0 %v503_v2  ;;  %466 = vmatpush3.bf16.msra.mxu1 %v465_v35  ;;  %v214_v19 = vld [vmem:[%s720_s5 + $0x40] sm:$0xff]  ;;  %v217_v23 = vld [vmem:[%s720_s5 + $0x58] sm:$0xff]  ;;  %v219_v26 = vld [vmem:[%s720_s5 + $0x68] sm:$0xff] }
   0xc   :  { %467 = vmatprep.subr.bf16.mxu1 %v503_v2  ;;  %v218_v25 = vld [vmem:[%s720_s5 + $0x60] sm:$0xff]  ;;  %v220_v29 = vld [vmem:[%s720_s5 + $0x70] sm:$0xff]  ;;  %v221_v30 = vld [vmem:[%s720_s5 + $0x78] sm:$0xff] }
   0xd   :  { %448 = vmatpush3.bf16.msra.mxu0 %v447_v15  ;;  %v318_v32 = vld [vmem:[%s723_s4] ss:$0 sm:$0xff] }
   0xe   :  { %449 = vmatprep.subr.bf16.mxu0 %v503_v2 }
   0xf   :  { %469 = vmatpush3.bf16.msra.mxu1 %v468_v37 }
  0x10   :  { %470 = vmatprep.subr.bf16.mxu1 %v503_v2 }
  0x11   :  { %451 = vmatpush3.bf16.msra.mxu0 %v450_v18 }
  0x12   :  { %452 = vmatprep.subr.bf16.mxu0 %v503_v2 }
  0x13   :  { %472 = vmatpush3.bf16.msra.mxu1 %v471_v40 }
  0x14   :  { %473 = vmatprep.subr.bf16.mxu1 %v503_v2 }
  0x15   :  { %454 = vmatpush3.bf16.msra.mxu0 %v453_v21  ;;  %v477_v21 = vpack.c.bf16 %v215_v20, %v214_v19 }
  0x16   :  { %455 = vmatprep.subr.bf16.mxu0 %v503_v2 }
  0x19   :  { %457 = vmatpush3.bf16.msra.mxu0 %v456_v24  ;;  %v480_v24 = vpack.c.bf16 %v217_v23, %v216_v22 }
  0x1a   :  { %458 = vmatprep.subr.bf16.mxu0 %v503_v2 }
  0x1d   :  { %460 = vmatpush3.bf16.msra.mxu0 %v459_v27  ;;  %v483_v27 = vpack.c.bf16 %v219_v26, %v218_v25 }
  0x1e   :  { %461 = vmatprep.subr.bf16.mxu0 %v503_v2 }
  0x21   :  { %463 = vmatpush3.bf16.msra.mxu0 %v462_v31  ;;  %v486_v31 = vpack.c.bf16 %v221_v30, %v220_v29 }
  0x8f   :  { %v32_v41 = vpop.xlane.xlu1 %31  ;;  %v30_v42 = vpop.xlane.xlu0 %29 }
  0x90   :  { %v36_v43 = vmul.f32 0.0078125, %v32_v41  ;;  %v35_v44 = vmul.f32 0.0078125, %v30_v42 }
  0x92   :  { %v51_v45 = vmul.f32 %v36_v43, %v36_v43  ;;  %v50_v48 = vmul.f32 %v35_v44, %v35_v44  ;;  %v63_v63 = vsub.f32 %v549_v0, %v36_v43  ;;  %v62_v3 = vsub.f32 %v554_v1, %v35_v44 }
  0x93   :  { %v44_v46 = vpop.xlane.xlu1 %43  ;;  %v42_v47 = vpop.xlane.xlu0 %41 }
  0x94   :  { %v48_v49 = vmul.f32 0.0078125, %v44_v46  ;;  %v47_v50 = vmul.f32 0.0078125, %v42_v47 }
  0x96   :  { %v54_v51 = vsub.f32 %v48_v49, %v51_v45  ;;  %v53_v52 = vsub.f32 %v47_v50, %v50_v48 }
  0x97   :  { %v34_v53 = vpop.xlane.xlu0 %33  ;;  %v46_v54 = vpop.xlane.xlu1 %45 }
  0x98   :  { %v57_v55 = vadd.f32 1e-05, %v54_v51  ;;  %v56_v56 = vadd.f32 1e-05, %v53_v52  ;;  %v37_v57 = vmul.f32 0.0078125, %v34_v53  ;;  %v49_v58 = vmul.f32 0.0078125, %v46_v54 }
  0x9a   :  { %491 = vrsqrt.f32 %v57_v55  ;;  %v52_v59 = vmul.f32 %v37_v57, %v37_v57  ;;  %v64_v11 = vsub.f32 %v573_v7, %v37_v57  ;;  %v212_v7 = vld [vmem:[%s720_s5 + $0x30] sm:$0xff] }
  0x9b   :  { %493 = vrsqrt.f32 %v56_v56  ;;  %v474_v18 = vpack.c.bf16 %v213_v17, %v212_v7  ;;  %v319_v56 = vld [vmem:[%s724_s6] ss:$0 sm:$0xff] }
  0x9c   :  { %v55_v60 = vsub.f32 %v49_v58, %v52_v59 }
  0x9d   :  { %475 = vmatpush3.bf16.msra.mxu1 %v474_v18 }
  0x9e   :  { %v58_v61 = vadd.f32 1e-05, %v55_v60  ;;  %476 = vmatprep.subr.bf16.mxu1 %v503_v2 }
  0xa0   :  { %495 = vrsqrt.f32 %v58_v61 }
  0xa1   :  { %478 = vmatpush3.bf16.msra.mxu1 %v477_v21 }
  0xa2   :  { %479 = vmatprep.subr.bf16.mxu1 %v503_v2 }
  0xa4   :  { %v492_v62 = vpop.eup %491 }
  0xa5   :  { %v494_v4 = vpop.eup %493  ;;  %v66_v8 = vmul.f32 %v492_v62, %v63_v63  ;;  %481 = vmatpush3.bf16.msra.mxu1 %v480_v24 }
  0xa6   :  { %v65_v6 = vmul.f32 %v494_v4, %v62_v3  ;;  %482 = vmatprep.subr.bf16.mxu1 %v503_v2 }
  0xa7   :  { %v76_v14 = vmul.f32 %v316_v5, %v66_v8 }
  0xa8   :  { %v75_v10 = vmul.f32 %v316_v5, %v65_v6 }
  0xa9   :  { %v86_v1 = vadd.f32 %v317_v9, %v76_v14  ;;  %484 = vmatpush3.bf16.msra.mxu1 %v483_v27 }
  0xaa   :  { %v496_v12 = vpop.eup %495  ;;  %v85_v13 = vadd.f32 %v317_v9, %v75_v10  ;;  %485 = vmatprep.subr.bf16.mxu1 %v503_v2 }
  0xab   :  { %v67_v0 = vmul.f32 %v496_v12, %v64_v11 }
  0xac   :  { %391 = vmatmul.mubr.f32.vlgmr.msra.gmra.mrb[0].mxu0 %v85_v13 }
  0xad   :  { %393 = vmatprep.mubr.msk.f32.mxu0 %vm504_vm0, %v505_v28  ;;  %v77_v15 = vmul.f32 %v316_v5, %v67_v0  ;;  %487 = vmatpush3.bf16.msra.mxu1 %v486_v31 }
  0xaf   :  { %v87_v16 = vadd.f32 %v317_v9, %v77_v15 }
  0xb0   :  { %394 = vmatmul.mubr.f32.gmra.mrb[2].mxu0 %v86_v1 }
  0xb1   :  { %396 = vmatprep.mubr.msk.f32.mxu0 %vm504_vm0, %v505_v28 }
  0xb4   :  { %397 = vmatmul.mubr.f32.gmra.mrb[4].mxu0 %v87_v16 }
 0x17f   :  { %v177_v33 = vpop.f32.mrb[0].mxu0 }
 0x180   :  { %v178_v34 = vadd.f32 %v318_v32, %v177_v33  ;;  %v392_v35 = vpop.f32.mrb[1].mxu0 }
 0x182   :  { %v194_v36 = vmul.f32 0.70710677, %v178_v34  ;;  %v191_v45 = vmul.f32 0.5, %v178_v34 }
 0x183   :  { %v182_v37 = vpop.f32.mrb[2].mxu0 }
 0x184   :  { %497 = verf.f32 %v194_v36  ;;  %v183_v2 = vadd.f32 %v318_v32, %v182_v37  ;;  %v395_v38 = vpop.f32.mrb[3].mxu0 }
 0x186   :  { %v195_v39 = vmul.f32 0.70710677, %v183_v2  ;;  %v192_v49 = vmul.f32 0.5, %v183_v2 }
 0x187   :  { %v187_v40 = vpop.f32.mrb[4].mxu0 }
 0x188   :  { %499 = verf.f32 %v195_v39  ;;  %v188_v41 = vadd.f32 %v318_v32, %v187_v40  ;;  %v398_v42 = vpop.f32.mrb[5].mxu0 }
 0x18a   :  { %v196_v43 = vmul.f32 0.70710677, %v188_v41  ;;  %v193_v53 = vmul.f32 0.5, %v188_v41 }
 0x18c   :  { %501 = verf.f32 %v196_v43 }
 0x18e   :  { %v498_v44 = vpop.eup %497 }
 0x18f   :  { %v200_v46 = vadd.f32 1.0, %v498_v44 }
 0x191   :  { %v203_v47 = vmul.f32 %v200_v46, %v191_v45 }
 0x192   :  { %v500_v48 = vpop.eup %499 }
 0x193   :  { %v201_v50 = vadd.f32 1.0, %v500_v48  ;;  %432 = vmatmul.mubr.f32.vlgmr.msra.gmra.mrb[0].mxu1 %v203_v47 }
 0x194   :  { %434 = vmatprep.mubr.msk.f32.mxu1 %vm504_vm0, %v505_v28 }
 0x195   :  { %v204_v51 = vmul.f32 %v201_v50, %v192_v49 }
 0x196   :  { %v502_v52 = vpop.eup %501 }
 0x197   :  { %v202_v54 = vadd.f32 1.0, %v502_v52  ;;  %435 = vmatmul.mubr.f32.gmra.mrb[2].mxu1 %v204_v51 }
 0x198   :  { %437 = vmatprep.mubr.msk.f32.mxu1 %vm504_vm0, %v505_v28 }
 0x199   :  { %v205_v55 = vmul.f32 %v202_v54, %v193_v53 }
 0x19b   :  { %438 = vmatmul.mubr.f32.gmra.mrb[4].mxu1 %v205_v55 }
 0x266   :  { %v295_v57 = vpop.f32.mrb[0].mxu1 }
 0x267   :  { %v296_v58 = vadd.f32 %v319_v56, %v295_v57  ;;  %v433_v59 = vpop.f32.mrb[1].mxu1 }
 0x269   :  { %309 = vst [vmem:[%s725_s7] sm:$0xff] %v296_v58 }
 0x26a   :  { %v300_v60 = vpop.f32.mrb[2].mxu1 }
 0x26b   :  { %v301_v61 = vadd.f32 %v319_v56, %v300_v60  ;;  %v436_v62 = vpop.f32.mrb[3].mxu1 }
 0x26d   :  { %310 = vst [vmem:[%s725_s7 + $0x8] sm:$0xff] %v301_v61 }
 0x26e   :  { %v305_v28 = vpop.f32.mrb[4].mxu1 }
 0x26f   :  { %v306_v63 = vadd.f32 %v319_v56, %v305_v28  ;;  %v439_v3 = vpop.f32.mrb[5].mxu1 }
 0x271   :  { %311 = vst [vmem:[%s725_s7 + $0x10] sm:$0xff] %v306_v63 }

</bundles_post_ra>
